<compile_context>
chip_gen: v7x
topology: tpu7x:2x2x1
jax: 0.10.0
libtpu: 0.0.40
codegen_flags: <defaults>
</compile_context>

<pallas_src>
import jax
import jax.numpy as jnp
from jax.experimental import pallas as pl
from jax.experimental.pallas import tpu as pltpu

_LANE = 128          # vreg lane width
_MAX_COLS = 2048     # keep the lane dimension a large (but bounded) multiple of 128
_TARGET_TILE_BYTES = 2 * 1024 * 1024  # ~2 MiB per tile: pipelines well, fits all gens
                                      # (4 double-buffered tiles = 8 MiB < 16 MiB v5e scoped VMEM)


def _identity_kernel(x_ref, o_ref):
    # Pure elementwise copy of the current VMEM tile.
    o_ref[...] = x_ref[...]


def _pick_layout(shape, total):
    """Pick a lane-dense (rows, cols) flattening of the array."""
    if total % _LANE == 0:
        cols = _LANE
        while cols * 2 <= _MAX_COLS and total % (cols * 2) == 0:
            cols *= 2
        return total // cols, cols
    # TODO(synk): totals not divisible by 128 fall back to the last-dim layout
    # (masked partial stores); still bit-exact, just lower store bandwidth.
    cols = shape[-1] if len(shape) >= 1 else 1
    return total // cols, cols


def _pick_tile_rows(rows, row_bytes):
    """Largest 8-aligned row tile <= ~_TARGET_TILE_BYTES (or full extent)."""
    raw = max(1, _TARGET_TILE_BYTES // max(row_bytes, 1))
    tile = max(8, (raw // 8) * 8)
    return rows if tile >= rows else tile


@jax.jit
def identity_copy_pallas(x: jax.Array) -> jax.Array:
    """Materialized Identity: tiled, lane-dense Pallas copy of `x`."""
    if x.size == 0:
        return x

    orig_shape = x.shape
    orig_dtype = x.dtype
    total = x.size

    rows, cols = _pick_layout(orig_shape, total)
    x2d = x.reshape(rows, cols)

    row_bytes = cols * x2d.dtype.itemsize
    tile_rows = _pick_tile_rows(rows, row_bytes)
    grid = (pl.cdiv(rows, tile_rows),)

    out = pl.pallas_call(
        _identity_kernel,
        out_shape=jax.ShapeDtypeStruct((rows, cols), orig_dtype),
        grid_spec=pltpu.PrefetchScalarGridSpec(
            num_scalar_prefetch=0,
            grid=grid,
            in_specs=[pl.BlockSpec((tile_rows, cols), lambda i: (i, 0))],
            out_specs=pl.BlockSpec((tile_rows, cols), lambda i: (i, 0)),
        ),
        compiler_params=pltpu.CompilerParams(
            # Row tiles are fully independent -> allow megacore sharding (v7x).
            dimension_semantics=("parallel",),
        ),
        # Reuse the input HBM buffer for the output when the caller donates it.
        input_output_aliases={0: 0},
        # Scheduler hint: zero compute, pure HBM read + write.
        cost_estimate=pl.CostEstimate(
            flops=0,
            transcendentals=0,
            bytes_accessed=2 * total * x2d.dtype.itemsize,
        ),
    )(x2d)

    return out.reshape(orig_shape)


def identity_forward(x: jax.Array) -> jax.Array:
    """Identity.forward(x) -> x.  Zero compute, zero HBM traffic."""
    return x


if __name__ == "__main__":
    key = jax.random.PRNGKey(0)

    # Shape consistent with typical conv-style input: NCHW = (2, 4, 16, 16)
    x = jax.random.normal(key, (2, 4, 16, 16), dtype=jnp.float32)

    # Zero-cost path (the real Identity semantics).
    y_fast = identity_forward(x)
    assert y_fast.shape == x.shape and y_fast.dtype == x.dtype
    assert jnp.array_equal(y_fast, x)

    # Pallas materialized-copy path (runs the kernel).
    y = jax.block_until_ready(identity_copy_pallas(x))
    assert y.shape == x.shape, f"shape mismatch: {y.shape} vs {x.shape}"
    assert y.dtype == x.dtype, f"dtype mismatch: {y.dtype} vs {x.dtype}"
    assert jnp.array_equal(y, x), "identity output differs from input"

    # Larger lane-dense input that exercises the multi-step pipelined grid.
    x_big = jax.random.normal(jax.random.PRNGKey(1), (4, 256, 1024), dtype=jnp.float32)
    y_big = jax.block_until_ready(identity_copy_pallas(x_big))
    assert y_big.shape == x_big.shape and y_big.dtype == x_big.dtype
    assert jnp.array_equal(y_big, x_big)

    # Odd-sized input exercising the non-128-divisible fallback layout.
    x_odd = jax.random.normal(jax.random.PRNGKey(2), (3, 5, 7), dtype=jnp.float32)
    y_odd = jax.block_until_ready(identity_copy_pallas(x_odd))
    assert y_odd.shape == x_odd.shape and y_odd.dtype == x_odd.dtype
    assert jnp.array_equal(y_odd, x_odd)

    print("KERNEL_OK")
</pallas_src>

<mosaic_0001>
module attributes {stable_mosaic.version = 11 : i64} {
  func.func @_identity_kernel(%arg0: i32, %arg1: memref<1x2048xf32, #tpu.memory_space<vmem>>, %arg2: memref<1x2048xf32, #tpu.memory_space<vmem>>) attributes {dimension_semantics = [#tpu.dimension_semantics<parallel>], iteration_bounds = array<i64: 1>, scalar_prefetch = 0 : i64, scratch_operands = 0 : i64, tpu.core_type = #tpu.core_type<tc>, window_params = [{transform_indices = @transform_0, window_bounds = array<i64: 1, 2048>}, {transform_indices = @transform_1, window_bounds = array<i64: 1, 2048>}]} {
    %c0 = arith.constant 0 : index
    %c0_0 = arith.constant 0 : index
    %0 = vector.load %arg1[%c0, %c0_0] : memref<1x2048xf32, #tpu.memory_space<vmem>>, vector<1x2048xf32>
    %c0_1 = arith.constant 0 : index
    %c0_2 = arith.constant 0 : index
    %1 = vector.load %arg2[%c0_1, %c0_2] : memref<1x2048xf32, #tpu.memory_space<vmem>>, vector<1x2048xf32>
    tpu.vector_store %arg2[%c0_1, %c0_2], %0 {strides = array<i32>} : memref<1x2048xf32, #tpu.memory_space<vmem>>, vector<1x2048xf32>,
    return
  }
  func.func @transform_0(%arg0: i32) -> (i32, i32) {
    %c0_i32 = arith.constant 0 : i32
    %c0_i32_0 = arith.constant 0 : i32
    return %arg0, %c0_i32 : i32, i32
  }
  func.func @transform_1(%arg0: i32) -> (i32, i32) {
    %c0_i32 = arith.constant 0 : i32
    %c0_i32_0 = arith.constant 0 : i32
    return %arg0, %c0_i32 : i32, i32
  }
}

</mosaic_0001>

<bundles_post_ra>
// kernel: identity_copy_pallas.1
= control target key start
LH: loop header
LB: loop body
LE: loop exit
PB: predicated region body
PF: predicated region fallthrough
CT: control target
= control target key end

     0   :  { %s38_s0 = inlined_call_operand.vmem [shape: f32[1,2048], index: 0, kind: input, shape index: {}, may-alias: {0,1}]   ;;  %s39_s1 = inlined_call_operand.vmem [shape: f32[1,2048], index: 1, kind: output, shape index: {}, may-alias: {0,1}]  }
   0x1   :  { %v8_v0 = vld [vmem:[%s38_s0] sm:$0xff]  ;;  %v9_v1 = vld [vmem:[%s38_s0 + $0x8] sm:$0xff] }
   0x2   :  { %10 = vst [vmem:[%s39_s1] sm:$0xff] %v8_v0  ;;  %11 = vst [vmem:[%s39_s1 + $0x8] sm:$0xff] %v9_v1 }

</bundles_post_ra>
